<compile_context>
chip_gen: v5e
topology: v5e:2x2
jax: 0.10.0
libtpu: 0.0.40
codegen_flags: <defaults>
</compile_context>

<pallas_src>
import jax
import jax.numpy as jnp
from jax.experimental import pallas as pl
from jax.experimental.pallas import tpu as pltpu


def _innerprod_kernel(img_ref, scale_ref, snd_ref, bias_ref, out_ref):
    # img_ref:   (TB, C)       VMEM
    # scale_ref: (1, C)        VMEM (same block every step)
    # snd_ref:   (TB, C, THW)  VMEM (the big streamed block)
    # bias_ref:  (1,)          SMEM scalar
    # out_ref:   (TB, THW)     VMEM, lane-dense
    w = img_ref[...].astype(jnp.float32) * scale_ref[...].astype(jnp.float32)  # (TB, C)
    # Feed the MXU in the streamed dtype (bf16 stays bf16; f32 stays f32).
    w = w.astype(snd_ref.dtype)
    # Batched matvec on the MXU: (TB, 1, C) x (TB, C, THW) -> (TB, 1, THW),
    # f32 accumulation.  No (TB, C, THW) f32 temporary is materialized.
    z = jax.lax.dot_general(
        w[:, None, :],
        snd_ref[...],
        dimension_numbers=(((2,), (1,)), ((0,), (0,))),
        preferred_element_type=jnp.float32,
    )
    out_ref[...] = (z[:, 0, :] + bias_ref[0]).astype(out_ref.dtype)


def _round_up(x, m):
    return ((x + m - 1) // m) * m


def _pick_tiles(B, C, HW, itemsize, target_dma_bytes=4 << 20):
    """Pick (TB, THW) so each feat_sound block DMA is ~1-8 MiB.

    Legality ((8,128) rule): TB must be a multiple of 8 or equal B; THW must be
    a multiple of 128 or equal HW.  C is never tiled (it is the contraction).
    """
    row_bytes = max(1, C * HW * itemsize)  # one batch row of feat_sound
    if row_bytes >= target_dma_bytes:
        # A single batch row already hits the DMA target: tile HW on lanes.
        tb = B if B < 8 else 8
        if HW % 128 == 0:
            thw = (target_dma_bytes // max(1, tb * C * itemsize) // 128) * 128
            thw = min(HW, max(128, thw))
        else:
            # TODO(synk): pad HW to a multiple of 128 for huge non-aligned maps.
            thw = HW
        return tb, thw

    # Whole rows fit: batch-tile up to the DMA target.
    tb = target_dma_bytes // row_bytes
    if tb >= B:
        tb = B
    elif B < 8:
        tb = B                              # tiny batch: single legal full-batch block
    else:
        tb = max(8, (tb // 8) * 8)          # multiple of 8, never exceeds B here

    # v7x megacore: keep >= 2 grid steps along the parallel batch axis when B permits.
    if B >= 16:
        cap = _round_up(-(-B // 2), 8)      # round_up(ceil(B/2), 8) <= B for B >= 16
        tb = min(tb, cap)
    return tb, HW


def _vmem_limit_bytes(tb, c, thw, snd_itemsize, img_itemsize):
    snd_blk = tb * c * thw * snd_itemsize
    img_blk = tb * c * img_itemsize
    out_blk = tb * thw * 4
    need = 2 * (snd_blk + img_blk + out_blk) + (8 << 20)   # double-buffer + headroom
    return int(min(96 << 20, max(32 << 20, need)))


def innerprod_forward(feat_img, feat_sound, scale, bias, *, target_dma_bytes=4 << 20):
    """feat_img: (B, C), feat_sound: (B, C, H, W), scale: (C,), bias: (1,)."""
    B, C, H, W = feat_sound.shape
    HW = H * W
    snd_flat = feat_sound.reshape(B, C, HW)
    img_2d = feat_img.reshape(B, C)
    scale_2d = scale.reshape(1, C).astype(jnp.float32)
    bias_1d = bias.reshape(1).astype(jnp.float32)

    snd_itemsize = jnp.dtype(feat_sound.dtype).itemsize
    img_itemsize = jnp.dtype(feat_img.dtype).itemsize
    TB, THW = _pick_tiles(B, C, HW, snd_itemsize, target_dma_bytes)
    grid = (pl.cdiv(B, TB), pl.cdiv(HW, THW))

    out_flat = pl.pallas_call(
        _innerprod_kernel,
        out_shape=jax.ShapeDtypeStruct((B, HW), jnp.float32),
        grid_spec=pltpu.PrefetchScalarGridSpec(
            num_scalar_prefetch=0,
            grid=grid,
            in_specs=[
                # feat_img: TB is a multiple of 8 or the full batch; C is full.
                pl.BlockSpec((TB, C), lambda i, j: (i, 0)),
                # scale: single (1, C) block reused every step.
                pl.BlockSpec((1, C), lambda i, j: (0, 0)),
                # feat_sound: C on sublanes (full), THW on lanes.
                pl.BlockSpec((TB, C, THW), lambda i, j: (i, 0, j)),
                # bias: scalar in SMEM.
                pl.BlockSpec(memory_space=pltpu.MemorySpace.SMEM),
            ],
            out_specs=pl.BlockSpec((TB, THW), lambda i, j: (i, j)),
        ),
        compiler_params=pltpu.CompilerParams(
            dimension_semantics=("parallel", "parallel"),
            vmem_limit_bytes=_vmem_limit_bytes(TB, C, THW, snd_itemsize, img_itemsize),
        ),
    )(img_2d, scale_2d, snd_flat, bias_1d)

    return out_flat.reshape(B, 1, H, W)


if __name__ == "__main__":
    # Small shapes consistent with the module: B=2, C(fc_dim)=64, H=W=16.
    B, C, H, W = 2, 64, 16, 16

    key = jax.random.PRNGKey(0)
    k_img, k_snd = jax.random.split(key)
    feat_img = jax.random.normal(k_img, (B, C), dtype=jnp.float32)
    feat_sound = jax.random.normal(k_snd, (B, C, H, W), dtype=jnp.float32)

    # Deterministic parameter init, exactly as in InnerProd.__init__:
    scale = jnp.ones((C,), dtype=jnp.float32)   # nn.Parameter(torch.ones(fc_dim))
    bias = jnp.zeros((1,), dtype=jnp.float32)   # nn.Parameter(torch.zeros(1))

    z = innerprod_forward(feat_img, feat_sound, scale, bias)
    z = jax.block_until_ready(z)

    # Reference (plain JAX, same math as the torch.bmm path), highest precision.
    z_ref = jnp.einsum("bc,bchw->bhw", feat_img * scale[None, :], feat_sound,
                       precision=jax.lax.Precision.HIGHEST)
    z_ref = z_ref[:, None, :, :] + bias[0]
    assert z.shape == (B, 1, H, W)
    # Tolerance accounts for the MXU f32 contraction path vs. exact f32 reference.
    assert jnp.allclose(z, z_ref, atol=1e-2, rtol=1e-2), float(jnp.max(jnp.abs(z - z_ref)))

    print("KERNEL_OK")
</pallas_src>

<mosaic_0001>
module attributes {stable_mosaic.version = 11 : i64} {
  func.func @_innerprod_kernel(%arg0: i32, %arg1: i32, %arg2: memref<2x64xf32, #tpu.memory_space<vmem>>, %arg3: memref<1x64xf32, #tpu.memory_space<vmem>>, %arg4: memref<2x64x256xf32, #tpu.memory_space<vmem>>, %arg5: memref<1xf32, #tpu.memory_space<smem>>, %arg6: memref<2x256xf32, #tpu.memory_space<vmem>>) attributes {dimension_semantics = [#tpu.dimension_semantics<parallel>, #tpu.dimension_semantics<parallel>], iteration_bounds = array<i64: 1, 1>, scalar_prefetch = 0 : i64, scratch_operands = 0 : i64, tpu.core_type = #tpu.core_type<tc>, window_params = [{transform_indices = @transform_0, window_bounds = array<i64: 2, 64>}, {pipeline_mode = #tpu.pipeline_mode<synchronous>, transform_indices = @transform_1, window_bounds = array<i64: 1, 64>}, {transform_indices = @transform_2, window_bounds = array<i64: 2, 64, 256>}, {transform_indices = @transform_3, window_bounds = array<i64: 1>}, {transform_indices = @transform_4, window_bounds = array<i64: 2, 256>}]} {
    %c0 = arith.constant 0 : index
    %c0_0 = arith.constant 0 : index
    %0 = vector.load %arg2[%c0, %c0_0] : memref<2x64xf32, #tpu.memory_space<vmem>>, vector<2x64xf32>
    %c0_1 = arith.constant 0 : index
    %c0_2 = arith.constant 0 : index
    %1 = vector.load %arg3[%c0_1, %c0_2] : memref<1x64xf32, #tpu.memory_space<vmem>>, vector<1x64xf32>
    %2 = vector.broadcast %1 : vector<1x64xf32> to vector<2x64xf32>
    %3 = arith.mulf %0, %2 : vector<2x64xf32>
    %4 = vector.shape_cast %3 : vector<2x64xf32> to vector<2x1x64xf32>
    %c0_3 = arith.constant 0 : index
    %c0_4 = arith.constant 0 : index
    %c0_5 = arith.constant 0 : index
    %5 = vector.load %arg4[%c0_3, %c0_4, %c0_5] : memref<2x64x256xf32, #tpu.memory_space<vmem>>, vector<2x64x256xf32>
    %cst = arith.constant dense<0.000000e+00> : vector<2x1x256xf32>
    %6 = tpu.matmul %4, %5, %cst {dimension_numbers = #tpu.dot_dimension_numbers<[2], [1], [1], [2], [0, 0, 0, 1, 1, 2], [0], [0]>} : vector<2x1x64xf32>, vector<2x64x256xf32>, vector<2x1x256xf32> -> vector<2x1x256xf32>
    %7 = vector.shape_cast %6 : vector<2x1x256xf32> to vector<2x256xf32>
    %c0_6 = arith.constant 0 : index
    %8 = memref.load %arg5[%c0_6] : memref<1xf32, #tpu.memory_space<smem>>
    %9 = vector.broadcast %8 : f32 to vector<2x256xf32>
    %10 = arith.addf %7, %9 : vector<2x256xf32>
    %c0_7 = arith.constant 0 : index
    %c0_8 = arith.constant 0 : index
    %11 = vector.load %arg6[%c0_7, %c0_8] : memref<2x256xf32, #tpu.memory_space<vmem>>, vector<2x256xf32>
    tpu.vector_store %arg6[%c0_7, %c0_8], %10 {strides = array<i32>} : memref<2x256xf32, #tpu.memory_space<vmem>>, vector<2x256xf32>,
    return
  }
  func.func @transform_0(%arg0: i32, %arg1: i32) -> (i32, i32) {
    %c0_i32 = arith.constant 0 : i32
    %c0_i32_0 = arith.constant 0 : i32
    return %arg0, %c0_i32 : i32, i32
  }
  func.func @transform_1(%arg0: i32, %arg1: i32) -> (i32, i32) {
    %c0_i32 = arith.constant 0 : i32
    %c0_i32_0 = arith.constant 0 : i32
    %c0_i32_1 = arith.constant 0 : i32
    return %c0_i32, %c0_i32_0 : i32, i32
  }
  func.func @transform_2(%arg0: i32, %arg1: i32) -> (i32, i32, i32) {
    %c0_i32 = arith.constant 0 : i32
    %c0_i32_0 = arith.constant 0 : i32
    return %arg0, %c0_i32, %arg1 : i32, i32, i32
  }
  func.func @transform_3(%arg0: i32, %arg1: i32) -> i32 {
    %c0_i32 = arith.constant 0 : i32
    %c0_i32_0 = arith.constant 0 : i32
    return %c0_i32 : i32
  }
  func.func @transform_4(%arg0: i32, %arg1: i32) -> (i32, i32) {
    %c0_i32 = arith.constant 0 : i32
    return %arg0, %arg1 : i32, i32
  }
}

</mosaic_0001>

<bundles_post_ra>
// kernel: tpu_custom_call.1
= control target key start
LH: loop header
LB: loop body
LE: loop exit
PB: predicated region body
PF: predicated region fallthrough
CT: control target
= control target key end

     0   :  { %10 = vsyncpa [#allocation4], 0  ;;  %s359_s0 = inlined_call_operand.vmem [shape: f32[2,64], index: 0, kind: input, shape index: {}]   ;;  %s360_s1 = inlined_call_operand.hbm [shape: f32[1,64], index: 1, kind: input, shape index: {}]   ;;  %s361_s2 = inlined_call_operand.hbm [shape: f32[2,64,256], index: 2, kind: input, shape index: {}]   ;;  %s362_s3 = inlined_call_operand.<no memory space> [shape: f32[1], index: 3, kind: input, shape index: {}]   ;;  %s363_s4 = inlined_call_operand.hbm [shape: f32[2,256], index: 4, kind: output, shape index: {}]  }
   0x1   :  { %11 = vsyncpa [#allocation7], 0 }
   0x2   :  { %12 = vsyncpa [#allocation5], 0  ;;  %s20_s17 = sshll.u32 %s360_s1, 4  ;;  %s310_s18 = smov [#allocation3]   ;;  %s21_s17 = int_to_ptr.hbm [resolvable:$true] %s20_s17 }
   0x3   :  { %s22_s19 = sshll.u32 %s310_s18, 4  ;;  %s30_s22 = sshll.u32 %s361_s2, 4  ;;  %s23_s19 = int_to_ptr.vmem [resolvable:$true] %s22_s19  ;;  %s31_s22 = int_to_ptr.hbm [resolvable:$true] %s30_s22 }
   0x4   :  { %25 = dma.hbm_to_vmem [thread:$0]  %s21_s17, 16, %s23_s19, [#allocation4]  }
   0x5   :  { %s311_s23 = smov [#allocation6]   ;;  %s312_s25 = smov 256  }
   0x6   :  { %s32_s24 = sshll.u32 %s311_s23, 4  ;;  %s313_s26 = smov 16   ;;  %s33_s24 = int_to_ptr.vmem [resolvable:$true] %s32_s24 }
   0x7   :  { %38 = dma.hbm_to_vmem [thread:$0]  %s31_s22, 4096, %s33_s24, [#allocation7], %s312_s25, %s312_s25, %s313_s26  }
   0x8   :  { %304 = dma.done.wait [#allocation4], 16  }
   0x9   :  { %305 = vsyncadd [#allocation4], 4294967280 }
   0xa   :  { %306 = dma.done.wait [#allocation7], 4096  }
   0xb   :  { %307 = vsyncadd [#allocation7], 4294963200  ;;  %v88_v0 = vld [vmem:[#allocation6 + $0xf8] sm:$0xff]  ;;  %v87_v1 = vld [vmem:[#allocation6 + $0xf0] sm:$0xff]  ;;  %vm89_vm0 = vcmask 523264   ;;  %v175_v36 = vstv %s362_s3  ;;  %vm186_vm1 = vcmask 1041408  }
   0xc   :  { %v86_v2 = vld [vmem:[#allocation6 + $0xe8] sm:$0xff]  ;;  %162 = vmatpush.msra.mxu3 %v88_v0  ;;  %142 = vmatpush.msra.mxu2 %v87_v1  ;;  %v85_v3 = vld [vmem:[#allocation6 + $0xe0] sm:$0xff]  ;;  %v84_v4 = vld [vmem:[#allocation6 + $0xd8] sm:$0xff]  ;;  %vm194_vm2 = vcmask 1041409   ;;  %vm196_vm3 = vcmask 1043459   ;;  %vm198_vm4 = vcmask 1045509  }
   0xd   :  { %v83_v5 = vld [vmem:[#allocation6 + $0xd0] sm:$0xff]  ;;  %v72_v6 = vld [vmem:[#allocation6 + $0x78] sm:$0xff]  ;;  %v70_v8 = vld [vmem:[#allocation6 + $0x68] sm:$0xff]  ;;  %s314_s28 = smov [#allocation8]   ;;  %s211_s5 = sshll.u32 %s363_s4, 4  ;;  %vm200_vm5 = vcmask 1047559   ;;  %s212_s5 = int_to_ptr.hbm [resolvable:$true] %s211_s5 }
   0xe   :  { %163 = vmatpush.msra.mxu3 %v86_v2  ;;  %143 = vmatpush.msra.mxu2 %v85_v3  ;;  %v71_v7 = vld [vmem:[#allocation6 + $0x70] sm:$0xff]  ;;  %v82_v9 = vld [vmem:[#allocation6 + $0xc8] sm:$0xff]  ;;  %v81_v10 = vld [vmem:[#allocation6 + $0xc0] sm:$0xff]  ;;  %s209_s29 = sshll.u32 %s314_s28, 4  ;;  %s210_s29 = int_to_ptr.vmem [resolvable:$true] %s209_s29 }
   0xf   :  { %120 = vmatpush.msra.mxu1 %v72_v6  ;;  %100 = vmatpush.msra.mxu0 %v71_v7  ;;  %v69_v11 = vld [vmem:[#allocation6 + $0x60] sm:$0xff]  ;;  %v80_v12 = vld [vmem:[#allocation6 + $0xb8] sm:$0xff]  ;;  %v79_v14 = vld [vmem:[#allocation6 + $0xb0] sm:$0xff] }
  0x10   :  { %164 = vmatpush.msra.mxu3 %v84_v4  ;;  %144 = vmatpush.msra.mxu2 %v83_v5  ;;  %v68_v13 = vld [vmem:[#allocation6 + $0x58] sm:$0xff]  ;;  %v78_v15 = vld [vmem:[#allocation6 + $0xa8] sm:$0xff]  ;;  %v67_v16 = vld [vmem:[#allocation6 + $0x50] sm:$0xff] }
  0x11   :  { %121 = vmatpush.msra.mxu1 %v70_v8  ;;  %101 = vmatpush.msra.mxu0 %v69_v11  ;;  %v66_v17 = vld [vmem:[#allocation6 + $0x48] sm:$0xff]  ;;  %v49_v18 = vld [vmem:[%s359_s0] sm:$0x3]  ;;  %v77_v19 = vld [vmem:[#allocation6 + $0xa0] sm:$0xff] }
  0x12   :  { %165 = vmatpush.msra.mxu3 %v82_v9  ;;  %145 = vmatpush.msra.mxu2 %v81_v10  ;;  %v231_v20 = vld [vmem:[#allocation3] ss:$0 sm:$0xff]  ;;  %v65_v21 = vld [vmem:[#allocation6 + $0x40] sm:$0xff]  ;;  %v63_v23 = vld [vmem:[#allocation6 + $0x30] sm:$0xff] }
  0x13   :  { %122 = vmatpush.msra.mxu1 %v68_v13  ;;  %102 = vmatpush.msra.mxu0 %v67_v16  ;;  %v64_v22 = vld [vmem:[#allocation6 + $0x38] sm:$0xff]  ;;  %v75_v25 = vld [vmem:[#allocation6 + $0x90] sm:$0xff]  ;;  %v54_v26 = vmul.f32 %v231_v20, %v49_v18  ;;  %v62_v27 = vld [vmem:[#allocation6 + $0x28] sm:$0xff] }
  0x14   :  { %166 = vmatpush.msra.mxu3 %v80_v12  ;;  %146 = vmatpush.msra.mxu2 %v79_v14  ;;  %v76_v24 = vld [vmem:[#allocation6 + $0x98] sm:$0xff]  ;;  %v61_v28 = vld [vmem:[#allocation6 + $0x20] sm:$0xff]  ;;  %v74_v29 = vld [vmem:[#allocation6 + $0x88] sm:$0xff] }
  0x15   :  { %123 = vmatpush.msra.mxu1 %v66_v17  ;;  %103 = vmatpush.msra.mxu0 %v65_v21  ;;  %v56_v30 = vrot.slane %v54_v26, 1  ;;  %v73_v31 = vld [vmem:[#allocation6 + $0x80] sm:$0xff]  ;;  %v60_v32 = vld [vmem:[#allocation6 + $0x18] sm:$0xff]  ;;  %v59_v33 = vld [vmem:[#allocation6 + $0x10] sm:$0xff] }
  0x16   :  { %167 = vmatpush.msra.mxu3 %v78_v15  ;;  %147 = vmatpush.msra.mxu2 %v77_v19  ;;  %v58_v34 = vld [vmem:[#allocation6 + $0x8] sm:$0xff]  ;;  %v57_v35 = vld [vmem:[#allocation6] sm:$0xff] }
  0x17   :  { %124 = vmatpush.msra.mxu1 %v64_v22  ;;  %104 = vmatpush.msra.mxu0 %v63_v23 }
  0x18   :  { %168 = vmatpush.msra.mxu3 %v76_v24  ;;  %148 = vmatpush.msra.mxu2 %v75_v25 }
  0x19   :  { %125 = vmatpush.msra.mxu1 %v62_v27  ;;  %105 = vmatpush.msra.mxu0 %v61_v28 }
  0x1a   :  { %169 = vmatpush.msra.mxu3 %v74_v29  ;;  %149 = vmatpush.msra.mxu2 %v73_v31 }
  0x1b   :  { %225 = vmatmul.msk.f32.vlgmr.msra.gmra.mxu3 %vm89_vm0, %v56_v30  ;;  %224 = vmatmul.msk.f32.vlgmr.msra.gmra.mxu2 %vm89_vm0, %v56_v30 }
  0x1c   :  { %126 = vmatpush.msra.mxu1 %v60_v32  ;;  %106 = vmatpush.msra.mxu0 %v59_v33 }
  0x1e   :  { %127 = vmatpush.msra.mxu1 %v58_v34  ;;  %107 = vmatpush.msra.mxu0 %v57_v35 }
  0x1f   :  { %223 = vmatmul.msk.f32.vlgmr.msra.gmra.mxu1 %vm89_vm0, %v54_v26  ;;  %222 = vmatmul.msk.f32.vlgmr.msra.gmra.mxu0 %vm89_vm0, %v54_v26 }
  0x9c   :  { %v129_v37 = vpop.f32.mrf.mxu1  ;;  %v109_v38 = vpop.f32.mrf.mxu0 }
  0x9d   :  { %v177_v39 = vadd.f32 %v175_v36, %v129_v37  ;;  %v176_v45 = vadd.f32 %v175_v36, %v109_v38 }
  0x9e   :  { %v171_v40 = vpop.f32.mrf.mxu3  ;;  %v151_v41 = vpop.f32.mrf.mxu2 }
  0x9f   :  { %v179_v42 = vadd.f32 %v175_v36, %v171_v40  ;;  %v184_v43 = vrot.slane %v177_v39, 6  ;;  %v178_v44 = vadd.f32 %v175_v36, %v151_v41 }
  0xa1   :  { %v185_v46 = vrot.slane %v179_v42, 6  ;;  %v187_v48 = vsel %vm186_vm1, %v176_v45, %v184_v43 }
  0xa3   :  { %v188_v47 = vsel %vm186_vm1, %v178_v44, %v185_v46 }
  0xa4   :  { %v193_v49 = vrot.slane %v188_v47, 7 }
  0xa6   :  { %v195_v50 = vsel %vm194_vm2, %v193_v49, %v187_v48 }
  0xa7   :  { %v197_v51 = vsel %vm196_vm3, %v193_v49, %v195_v50 }
  0xa8   :  { %v199_v52 = vsel %vm198_vm4, %v193_v49, %v197_v51 }
  0xa9   :  { %v201_v53 = vsel %vm200_vm5, %v193_v49, %v199_v52 }
  0xaa   :  { %203 = vst [vmem:[#allocation8] sm:$0xf] %v201_v53 }
  0xab   :  { %214 = dma.vmem_to_hbm [thread:$0]  %s210_s29, 64, %s212_s5, [#allocation5]  }
  0xac   :  { %308 = dma.done.wait [#allocation5], 64  }
  0xad   :  { %309 = vsyncadd [#allocation5], 4294967232 }
  0xae   :  { %219 = vsyncpa [#allocation4], 1 }
  0xaf   :  { %220 = vsyncpa [#allocation7], 1 }
  0xb0   :  { %221 = vsyncpa [#allocation5], 1 }

</bundles_post_ra>
